<compile_context>
chip_gen: v7x
topology: tpu7x:2x2x1
jax: 0.10.0
libtpu: 0.0.40
codegen_flags: <defaults>
</compile_context>

<pallas_src>
import functools

import jax
import jax.numpy as jnp
from jax.experimental import pallas as pl
from jax.experimental.pallas import tpu as pltpu

_LANE = 128      # lane width (last-dim padding target for hidden/output dims)
_SUBLANE = 8     # sublane width (f32) -- first-layer K and batch padding

_TRANSCENDENTAL_ACTS = ("tanh", "softplus", "cos", "sin", "swish", "rbf")


def _round_up(n, m):
    return ((n + m - 1) // m) * m


def _apply_activation(y, activation):
    # Activation math is kept in f32 (v5e has no bf16 VPU/EUP; EUP ops like
    # tanh/exp run on a separate VLIW slot from the MXU/VPU).
    if activation == "tanh":
        return jnp.tanh(y)
    if activation == "relu":
        return jnp.maximum(y, 0.0)
    if activation == "softplus":
        # numerically stable softplus (exp + log1p; both EUP-class)
        return jnp.maximum(y, 0.0) + jnp.log1p(jnp.exp(-jnp.abs(y)))
    if activation == "cos":
        return jnp.cos(y)
    if activation == "sin":
        return jnp.sin(y)
    if activation == "leaky_relu":
        return jnp.where(y >= 0.0, y, 0.01 * y)
    if activation == "swish":
        # y * sigmoid(y); approx reciprocal uses an otherwise idle slot.
        return y * pl.reciprocal(1.0 + jnp.exp(-y), approx=True)
    if activation == "rbf":
        return jnp.exp(-(y * y))
    if activation in ("linear", None):
        return y
    raise ValueError(f"unknown activation: {activation}")


# ---------------------------------------------------------------------------
# Pallas kernel: the WHOLE MLP, fused, for one batch tile.
#   refs = (x_ref, w0_ref, b0_ref, w1_ref, b1_ref, ..., o_ref)
#   x_ref : (TB, D0p)  f32       (batch tile, sublane-padded input features)
#   wl_ref: (Dlp, D{l+1}p) bf16  (zero-padded weights, MXU operand dtype)
#   bl_ref: (1, D{l+1}p)  f32    (zero-padded bias row)
#   o_ref : (TB, DLp)  f32       (lane-dense padded output tile)
# ---------------------------------------------------------------------------
def _mlp_kernel(*refs, num_layers, activation, compute_dtype):
    x_ref = refs[0]
    o_ref = refs[-1]
    wb = refs[1:-1]

    h = x_ref[...]                                   # f32 activations
    for layer in range(num_layers):
        w = wb[2 * layer][...]                       # bf16 (or f32) weights
        b = wb[2 * layer + 1][...]                   # f32 bias row
        # MXU matmul: bf16 operands, f32 accumulation.
        h = jnp.dot(h.astype(compute_dtype), w,
                    preferred_element_type=jnp.float32) + b
        if layer < num_layers - 1:                   # no activation on output layer
            h = _apply_activation(h, activation)
    o_ref[...] = h.astype(o_ref.dtype)


# ---------------------------------------------------------------------------
# Wrapper: one pallas_call with a parallel batch grid.
# ---------------------------------------------------------------------------
def blanknet_forward(x, padded_params, activation_fn, output_dim,
                     compute_dtype=jnp.bfloat16, batch_tile=256):
    batch, din = x.shape
    din_p = padded_params[0][0].shape[0]       # sublane-padded input features
    dout_p = padded_params[-1][0].shape[1]     # lane-padded output features
    num_layers = len(padded_params)

    # Batch tiling: rows are a multiple of 8 (f32 activations); >=256 rows at
    # scale keeps the MXU fill/drain amortized, tiny batches collapse to 1 step.
    tile_b = min(batch_tile, _round_up(batch, _SUBLANE))
    batch_p = _round_up(batch, tile_b)
    grid = (batch_p // tile_b,)

    # Cheap input pad: only to (batch_p, din_p) where din_p is the SUBLANE
    # multiple of the real input dim (8 for f32), never 128.
    if (batch_p, din_p) != x.shape or x.dtype != jnp.float32:
        x_p = jnp.zeros((batch_p, din_p), jnp.float32).at[:batch, :din].set(
            x.astype(jnp.float32))
    else:
        x_p = x

    kernel = functools.partial(
        _mlp_kernel, num_layers=num_layers, activation=activation_fn,
        compute_dtype=compute_dtype)

    flat_inputs = [x_p]
    in_specs = [pl.BlockSpec((tile_b, din_p), lambda i: (i, 0))]
    for w_p, b_p in padded_params:
        flat_inputs.append(w_p)
        flat_inputs.append(b_p)
        # Constant block index -> weights/biases stay VMEM-resident across
        # all grid steps (fetched once).
        in_specs.append(pl.BlockSpec(w_p.shape, lambda i: (0, 0)))
        in_specs.append(pl.BlockSpec(b_p.shape, lambda i: (0, 0)))
    out_spec = pl.BlockSpec((tile_b, dout_p), lambda i: (i, 0))

    # --- advisory cost estimate ------------------------------------------
    flops = 0
    transcendentals = 0
    for idx, (w_p, _) in enumerate(padded_params):
        k, n = w_p.shape
        flops += 2 * batch_p * k * n
        if idx < num_layers - 1 and activation_fn in _TRANSCENDENTAL_ACTS:
            transcendentals += batch_p * n
    param_bytes = sum(int(w.size) * w.dtype.itemsize + int(b.size) * b.dtype.itemsize
                      for w, b in padded_params)
    io_bytes = batch_p * din_p * 4 + batch_p * dout_p * 4
    cost = pl.CostEstimate(flops=int(flops),
                           transcendentals=int(transcendentals),
                           bytes_accessed=int(param_bytes + io_bytes))

    # --- explicit VMEM budget (v7x: 64 MiB physical / 32 MiB default scoped,
    #     v5e: 16 MiB default scoped) ------------------------------------
    max_width = max(int(w.shape[1]) for w, _ in padded_params)
    tile_bytes = 2 * (tile_b * din_p * 4 + tile_b * dout_p * 4)   # 2x: double buffer
    act_bytes = 2 * tile_b * max_width * 4
    vmem_limit = int(min(64 << 20,
                         max(32 << 20, 4 * (param_bytes + tile_bytes + act_bytes))))

    out_p = pl.pallas_call(
        kernel,
        out_shape=jax.ShapeDtypeStruct((batch_p, dout_p), jnp.float32),
        grid=grid,
        in_specs=in_specs,
        out_specs=out_spec,
        compiler_params=pltpu.CompilerParams(
            dimension_semantics=("parallel",),     # shard batch across TCs (v7x)
            vmem_limit_bytes=vmem_limit),
        cost_estimate=cost,
    )(*flat_inputs)

    # Strip batch/feature padding right after the call so XLA can fuse the copy.
    return out_p[:batch, :output_dim]


# ---------------------------------------------------------------------------
# Parameter construction (matches BlankLayer.reset_parameters: std-normal init)
# ---------------------------------------------------------------------------
def init_blanknet_params(key, input_dim, hidden_dims, output_dim):
    dims = [input_dim] + list(hidden_dims) + [output_dim]
    params = []
    for i in range(len(dims) - 1):
        key, kw, kb = jax.random.split(key, 3)
        w = jax.random.normal(kw, (dims[i], dims[i + 1]), dtype=jnp.float32)
        b = jax.random.normal(kb, (dims[i + 1],), dtype=jnp.float32)
        params.append((w, b))
    return params


def pad_params(params, compute_dtype=jnp.bfloat16):
    """Zero-pad weights/biases once, at param-prep time.

    Layer 0's K dim is padded only to the sublane multiple (8); every layer's
    output dim is padded to a lane multiple (128), and layer l>0's K dim is
    the previous layer's padded output dim.  Zero padded rows/cols + zero bias
    lanes guarantee padded activation lanes never contaminate real lanes,
    even for activations with f(0) != 0.
    """
    padded = []
    prev_out_p = None
    for idx, (w, b) in enumerate(params):
        din, dout = w.shape
        din_p = _round_up(din, _SUBLANE) if idx == 0 else prev_out_p
        dout_p = _round_up(dout, _LANE)
        w_p = (jnp.zeros((din_p, dout_p), jnp.float32)
               .at[:din, :dout].set(w).astype(compute_dtype))
        b_p = jnp.zeros((1, dout_p), jnp.float32).at[0, :dout].set(b)
        padded.append((w_p, b_p))
        prev_out_p = dout_p
    return padded


if __name__ == "__main__":
    # Shapes consistent with BlankNet(output_dim=2, hidden_dims=[32, 32],
    # activation_fn='tanh', input_dim=4), batch=8.
    key = jax.random.PRNGKey(0)
    key, kx = jax.random.split(key)

    batch = 8
    input_dim = 4
    hidden_dims = [32, 32]
    output_dim = 2
    activation_fn = "tanh"
    compute_dtype = jnp.bfloat16   # MXU operand dtype; accumulation stays f32

    x = jax.random.normal(kx, (batch, input_dim), dtype=jnp.float32)
    params = init_blanknet_params(key, input_dim, hidden_dims, output_dim)
    padded_params = pad_params(params, compute_dtype=compute_dtype)

    fwd = jax.jit(
        functools.partial(
            blanknet_forward, activation_fn=activation_fn,
            output_dim=output_dim, compute_dtype=compute_dtype)
    )
    out = fwd(x, padded_params)
    out = jax.block_until_ready(out)

    # Pure-JAX reference with identical numerics (bf16 MXU operands, f32
    # accumulation, f32 activations) -- isolates kernel correctness from
    # bf16 quantization of the weights.
    ref = x
    for i, (w, b) in enumerate(params):
        ref = jnp.dot(ref.astype(compute_dtype), w.astype(compute_dtype),
                      preferred_element_type=jnp.float32) + b
        if i < len(params) - 1:
            ref = jnp.tanh(ref)

    assert out.shape == (batch, output_dim), out.shape
    assert jnp.allclose(out, ref, atol=2e-3, rtol=2e-3), "mismatch vs reference"

    print("KERNEL_OK")
</pallas_src>

<mosaic_0001>
module attributes {stable_mosaic.version = 11 : i64} {
  func.func @_mlp_kernel(%arg0: i32, %arg1: memref<8x8xf32, #tpu.memory_space<vmem>>, %arg2: memref<8x128xbf16, #tpu.memory_space<vmem>>, %arg3: memref<1x128xf32, #tpu.memory_space<vmem>>, %arg4: memref<128x128xbf16, #tpu.memory_space<vmem>>, %arg5: memref<1x128xf32, #tpu.memory_space<vmem>>, %arg6: memref<128x128xbf16, #tpu.memory_space<vmem>>, %arg7: memref<1x128xf32, #tpu.memory_space<vmem>>, %arg8: memref<8x128xf32, #tpu.memory_space<vmem>>) attributes {dimension_semantics = [#tpu.dimension_semantics<parallel>], iteration_bounds = array<i64: 1>, scalar_prefetch = 0 : i64, scratch_operands = 0 : i64, tpu.core_type = #tpu.core_type<tc>, window_params = [{transform_indices = @transform_0, window_bounds = array<i64: 8, 8>}, {pipeline_mode = #tpu.pipeline_mode<synchronous>, transform_indices = @transform_1, window_bounds = array<i64: 8, 128>}, {pipeline_mode = #tpu.pipeline_mode<synchronous>, transform_indices = @transform_2, window_bounds = array<i64: 1, 128>}, {pipeline_mode = #tpu.pipeline_mode<synchronous>, transform_indices = @transform_3, window_bounds = array<i64: 128, 128>}, {pipeline_mode = #tpu.pipeline_mode<synchronous>, transform_indices = @transform_4, window_bounds = array<i64: 1, 128>}, {pipeline_mode = #tpu.pipeline_mode<synchronous>, transform_indices = @transform_5, window_bounds = array<i64: 128, 128>}, {pipeline_mode = #tpu.pipeline_mode<synchronous>, transform_indices = @transform_6, window_bounds = array<i64: 1, 128>}, {transform_indices = @transform_7, window_bounds = array<i64: 8, 128>}]} {
    %c0 = arith.constant 0 : index
    %c0_0 = arith.constant 0 : index
    %0 = vector.load %arg1[%c0, %c0_0] : memref<8x8xf32, #tpu.memory_space<vmem>>, vector<8x8xf32>
    %c0_1 = arith.constant 0 : index
    %c0_2 = arith.constant 0 : index
    %1 = vector.load %arg2[%c0_1, %c0_2] : memref<8x128xbf16, #tpu.memory_space<vmem>>, vector<8x128xbf16>
    %c0_3 = arith.constant 0 : index
    %c0_4 = arith.constant 0 : index
    %2 = vector.load %arg3[%c0_3, %c0_4] : memref<1x128xf32, #tpu.memory_space<vmem>>, vector<1x128xf32>
    %3 = arith.truncf %0 : vector<8x8xf32> to vector<8x8xbf16>
    %cst = arith.constant dense<0.000000e+00> : vector<8x128xf32>
    %4 = tpu.matmul %3, %1, %cst {dimension_numbers = #tpu.dot_dimension_numbers<[1], [0], [0], [1], [0, 0, 1, 1], [], []>} : vector<8x8xbf16>, vector<8x128xbf16>, vector<8x128xf32> -> vector<8x128xf32>
    %5 = vector.broadcast %2 : vector<1x128xf32> to vector<8x128xf32>
    %6 = arith.addf %4, %5 : vector<8x128xf32>
    %7 = math.tanh %6 : vector<8x128xf32>
    %c0_5 = arith.constant 0 : index
    %c0_6 = arith.constant 0 : index
    %8 = vector.load %arg4[%c0_5, %c0_6] : memref<128x128xbf16, #tpu.memory_space<vmem>>, vector<128x128xbf16>
    %c0_7 = arith.constant 0 : index
    %c0_8 = arith.constant 0 : index
    %9 = vector.load %arg5[%c0_7, %c0_8] : memref<1x128xf32, #tpu.memory_space<vmem>>, vector<1x128xf32>
    %10 = arith.truncf %7 : vector<8x128xf32> to vector<8x128xbf16>
    %cst_9 = arith.constant dense<0.000000e+00> : vector<8x128xf32>
    %11 = tpu.matmul %10, %8, %cst_9 {dimension_numbers = #tpu.dot_dimension_numbers<[1], [0], [0], [1], [0, 0, 1, 1], [], []>} : vector<8x128xbf16>, vector<128x128xbf16>, vector<8x128xf32> -> vector<8x128xf32>
    %12 = vector.broadcast %9 : vector<1x128xf32> to vector<8x128xf32>
    %13 = arith.addf %11, %12 : vector<8x128xf32>
    %14 = math.tanh %13 : vector<8x128xf32>
    %c0_10 = arith.constant 0 : index
    %c0_11 = arith.constant 0 : index
    %15 = vector.load %arg6[%c0_10, %c0_11] : memref<128x128xbf16, #tpu.memory_space<vmem>>, vector<128x128xbf16>
    %c0_12 = arith.constant 0 : index
    %c0_13 = arith.constant 0 : index
    %16 = vector.load %arg7[%c0_12, %c0_13] : memref<1x128xf32, #tpu.memory_space<vmem>>, vector<1x128xf32>
    %17 = arith.truncf %14 : vector<8x128xf32> to vector<8x128xbf16>
    %cst_14 = arith.constant dense<0.000000e+00> : vector<8x128xf32>
    %18 = tpu.matmul %17, %15, %cst_14 {dimension_numbers = #tpu.dot_dimension_numbers<[1], [0], [0], [1], [0, 0, 1, 1], [], []>} : vector<8x128xbf16>, vector<128x128xbf16>, vector<8x128xf32> -> vector<8x128xf32>
    %19 = vector.broadcast %16 : vector<1x128xf32> to vector<8x128xf32>
    %20 = arith.addf %18, %19 : vector<8x128xf32>
    %c0_15 = arith.constant 0 : index
    %c0_16 = arith.constant 0 : index
    %21 = vector.load %arg8[%c0_15, %c0_16] : memref<8x128xf32, #tpu.memory_space<vmem>>, vector<8x128xf32>
    tpu.vector_store %arg8[%c0_15, %c0_16], %20 {strides = array<i32>} : memref<8x128xf32, #tpu.memory_space<vmem>>, vector<8x128xf32>,
    return
  }
  func.func @transform_0(%arg0: i32) -> (i32, i32) {
    %c0_i32 = arith.constant 0 : i32
    %c0_i32_0 = arith.constant 0 : i32
    return %arg0, %c0_i32 : i32, i32
  }
  func.func @transform_1(%arg0: i32) -> (i32, i32) {
    %c0_i32 = arith.constant 0 : i32
    %c0_i32_0 = arith.constant 0 : i32
    %c0_i32_1 = arith.constant 0 : i32
    return %c0_i32, %c0_i32_0 : i32, i32
  }
  func.func @transform_2(%arg0: i32) -> (i32, i32) {
    %c0_i32 = arith.constant 0 : i32
    %c0_i32_0 = arith.constant 0 : i32
    %c0_i32_1 = arith.constant 0 : i32
    return %c0_i32, %c0_i32_0 : i32, i32
  }
  func.func @transform_3(%arg0: i32) -> (i32, i32) {
    %c0_i32 = arith.constant 0 : i32
    %c0_i32_0 = arith.constant 0 : i32
    %c0_i32_1 = arith.constant 0 : i32
    return %c0_i32, %c0_i32_0 : i32, i32
  }
  func.func @transform_4(%arg0: i32) -> (i32, i32) {
    %c0_i32 = arith.constant 0 : i32
    %c0_i32_0 = arith.constant 0 : i32
    %c0_i32_1 = arith.constant 0 : i32
    return %c0_i32, %c0_i32_0 : i32, i32
  }
  func.func @transform_5(%arg0: i32) -> (i32, i32) {
    %c0_i32 = arith.constant 0 : i32
    %c0_i32_0 = arith.constant 0 : i32
    %c0_i32_1 = arith.constant 0 : i32
    return %c0_i32, %c0_i32_0 : i32, i32
  }
  func.func @transform_6(%arg0: i32) -> (i32, i32) {
    %c0_i32 = arith.constant 0 : i32
    %c0_i32_0 = arith.constant 0 : i32
    %c0_i32_1 = arith.constant 0 : i32
    return %c0_i32, %c0_i32_0 : i32, i32
  }
  func.func @transform_7(%arg0: i32) -> (i32, i32) {
    %c0_i32 = arith.constant 0 : i32
    %c0_i32_0 = arith.constant 0 : i32
    return %arg0, %c0_i32 : i32, i32
  }
}

</mosaic_0001>

<bundles_post_ra>
// kernel: blanknet_forward.1
= control target key start
LH: loop header
LB: loop body
LE: loop exit
PB: predicated region body
PF: predicated region fallthrough
CT: control target
= control target key end

     0   :  { %12 = vsyncpa [#allocation3], 0  ;;  %s680_s0 = inlined_call_operand.vmem [shape: f32[8,8], index: 0, kind: input, shape index: {}]   ;;  %s681_s1 = inlined_call_operand.vmem [shape: bf16[8,128], index: 1, kind: input, shape index: {}]   ;;  %s682_s2 = inlined_call_operand.hbm [shape: f32[1,128], index: 2, kind: input, shape index: {}]   ;;  %s683_s3 = inlined_call_operand.hbm [shape: bf16[128,128], index: 3, kind: input, shape index: {}]   ;;  %s684_s4 = inlined_call_operand.hbm [shape: f32[1,128], index: 4, kind: input, shape index: {}]   ;;  %s685_s5 = inlined_call_operand.vmem [shape: bf16[128,128], index: 5, kind: input, shape index: {}]   ;;  %s686_s6 = inlined_call_operand.vmem [shape: f32[1,128], index: 6, kind: input, shape index: {}]   ;;  %s687_s7 = inlined_call_operand.vmem [shape: f32[8,128], index: 7, kind: output, shape index: {}]  }
   0x1   :  { %13 = vsyncpa [#allocation5], 0  ;;  %s538_s24 = smov [#allocation4]   ;;  %s468_s28 = scalar_lea.hbm %s683_s3, 1024 }
   0x2   :  { %s33_s25 = sshll.u32 %s538_s24, 4  ;;  %p469_p0 = scmp.ne.s32.totalorder %s683_s3, %s468_s28  ;;  %s34_s25 = int_to_ptr.vmem [resolvable:$true] %s33_s25 }
   0x3   :  { %p472_p1 = scmp.lt.u32.totalorder %s468_s28, %s683_s3 }
   0x5   :  { %p474_p2 = pnand %p472_p1, %p469_p0 }
   0x7   :  { %477 = shalt.err (!%p474_p2)
}
   0x8   :  { %s478_s10 = scalar_lea.vmem %s34_s25, 1024  ;;  %p483_p4 = scmp.lt.s32.totalorder %s34_s25, %s34_s25 }
   0x9   :  { %p479_p3 = scmp.ne.s32.totalorder %s34_s25, %s478_s10  ;;  %p484_p5 = scmp.lt.s32.totalorder %s478_s10, %s478_s10 }
   0xb   :  { %p485_p6 = por %p484_p5, %p483_p4 }
   0xd   :  { %p486_p7 = pnand %p485_p6, %p479_p3 }
   0xf   :  { %489 = shalt.err (!%p486_p7)
}
  0x10   :  { %s539_s11 = smov 64   ;;  %s540_s12 = smov 4  }
  0x11   :  { %39 = dma.hbm_to_vmem [thread:$0]  %s683_s3, 1024, %s34_s25, [#allocation5], %s539_s11, %s539_s11, %s540_s12  }
  0x12   :  { %s541_s15 = smov [#allocation2]   ;;  %s542_s17 = smov [#allocation6]  }
  0x13   :  { %s24_s16 = sshll.u32 %s541_s15, 4  ;;  %s46_s18 = sshll.u32 %s542_s17, 4  ;;  %s25_s16 = int_to_ptr.vmem [resolvable:$true] %s24_s16  ;;  %s47_s18 = int_to_ptr.vmem [resolvable:$true] %s46_s18 }
  0x14   :  { %s490_s21 = scalar_lea.hbm %s682_s2, 16 }
  0x15   :  { %p491_p8 = scmp.ne.s32.totalorder %s682_s2, %s490_s21  ;;  %p494_p9 = scmp.lt.u32.totalorder %s490_s21, %s682_s2 }
  0x17   :  { %p496_p10 = pnand %p494_p9, %p491_p8 }
  0x19   :  { %499 = shalt.err (!%p496_p10)
}
  0x1a   :  { %s500_s3 = scalar_lea.vmem %s25_s16, 16  ;;  %s504_s25 = scalar_lea.vmem %s25_s16, 32 }
  0x1b   :  { %p501_p11 = scmp.ne.s32.totalorder %s25_s16, %s500_s3  ;;  %p505_p12 = scmp.lt.s32.totalorder %s25_s16, %s25_s16 }
  0x1c   :  { %p506_p13 = scmp.lt.s32.totalorder %s504_s25, %s500_s3 }
  0x1e   :  { %p507_p0 = por %p506_p13, %p505_p12 }
  0x20   :  { %p508_p1 = pnand %p507_p0, %p501_p11 }
  0x22   :  { %511 = shalt.err (!%p508_p1)
}
  0x23   :  { %27 = dma.hbm_to_vmem [thread:$0]  %s682_s2, 16, %s25_s16, [#allocation3]  }
  0x24   :  { %s512_s8 = scalar_lea.hbm %s684_s4, 16 }
  0x25   :  { %p513_p2 = scmp.ne.s32.totalorder %s684_s4, %s512_s8  ;;  %p516_p3 = scmp.lt.u32.totalorder %s512_s8, %s684_s4 }
  0x27   :  { %p518_p4 = pnand %p516_p3, %p513_p2 }
  0x29   :  { %521 = shalt.err (!%p518_p4)
}
  0x2a   :  { %s522_s13 = scalar_lea.vmem %s47_s18, 16  ;;  %s526_s14 = scalar_lea.vmem %s47_s18, 32 }
  0x2b   :  { %p523_p5 = scmp.ne.s32.totalorder %s47_s18, %s522_s13  ;;  %p527_p6 = scmp.lt.s32.totalorder %s47_s18, %s47_s18 }
  0x2c   :  { %p528_p7 = scmp.lt.s32.totalorder %s526_s14, %s522_s13 }
  0x2e   :  { %p529_p8 = por %p528_p7, %p527_p6 }
  0x30   :  { %p530_p9 = pnand %p529_p8, %p523_p5 }
  0x32   :  { %533 = shalt.err (!%p530_p9)
}
  0x33   :  { %49 = dma.hbm_to_vmem [thread:$0]  %s684_s4, 16, %s47_s18, [#allocation5]  }
  0x34   :  { %534 = dma.done.wait [#allocation3], 16  }
  0x35   :  { %535 = vsyncadd [#allocation3], 4294967280 }
  0x36   :  { %536 = dma.done.wait [#allocation5], 1040  }
  0x37   :  { %537 = vsyncadd [#allocation5], 4294966256  ;;  %v543_v0 = vmov 0.0   ;;  %vm544_vm0 = vmmov 0   ;;  %vm78_vm1 = vcmask 1043456   ;;  %v64_v2 = vld [vmem:[%s680_s0] sm:$0xff] }
  0x38   :  { %395 = vmatprep.subr.bf16.mxu0 %v543_v0  ;;  %397 = vmatprep.mubr.msk.bf16.mxu0 %vm544_vm0, %v543_v0  ;;  %v65_v1 = vld [vmem:[%s681_s1] sm:$0xf]  ;;  %v67_v4 = vpack.c.bf16 %v64_v2, %v64_v2  ;;  %vm74_vm2 = vcmask 64512   ;;  %v449_v6 = vld [vmem:[#allocation4 + $0x8] sm:$0xff]   ;;  %v450_v7 = vld [vmem:[#allocation4 + $0x10] sm:$0xff]  }
  0x39   :  { %401 = vmatprep.subr.bf16.mxu1 %v543_v0  ;;  %417 = vmatprep.mubr.msk.bf16.mxu1 %vm544_vm0, %v543_v0  ;;  %v80_v3 = vsel %vm78_vm1, %v65_v1, 0  ;;  %v448_v5 = vld [vmem:[#allocation4] sm:$0xff]   ;;  %v451_v8 = vld [vmem:[#allocation4 + $0x18] sm:$0xff]   ;;  %v453_v10 = vld [vmem:[#allocation4 + $0x28] sm:$0xff]  }
  0x3a   :  { %396 = vmatpush3.bf16.msra.mxu0 %v80_v3  ;;  %402 = vmatpush3.bf16.msra.mxu1 %v448_v5  ;;  %v452_v9 = vld [vmem:[#allocation4 + $0x20] sm:$0xff]   ;;  %v454_v11 = vld [vmem:[#allocation4 + $0x30] sm:$0xff]   ;;  %v455_v12 = vld [vmem:[#allocation4 + $0x38] sm:$0xff]  }
  0x3b   :  { %421 = vmatprep.subr.bf16.mxu0 %v543_v0  ;;  %403 = vmatprep.subr.bf16.mxu1 %v543_v0  ;;  %v456_v13 = vld [vmem:[%s685_s5] sm:$0xff]   ;;  %v457_v14 = vld [vmem:[%s685_s5 + $0x8] sm:$0xff]   ;;  %v458_v15 = vld [vmem:[%s685_s5 + $0x10] sm:$0xff]  }
  0x3c   :  { %v459_v16 = vld [vmem:[%s685_s5 + $0x18] sm:$0xff]   ;;  %v355_v17 = vld [vmem:[#allocation2] ss:$0 sm:$0xff]  ;;  %v461_v26 = vld [vmem:[%s685_s5 + $0x28] sm:$0xff]  }
  0x3d   :  { %398 = vmatmul.mubr.msk.bf16.vlgmr.msra.gmra.mrb[0].mxu0 %vm74_vm2, %v67_v4  ;;  %v460_v25 = vld [vmem:[%s685_s5 + $0x20] sm:$0xff]   ;;  %v462_v27 = vld [vmem:[%s685_s5 + $0x30] sm:$0xff]   ;;  %v463_v28 = vld [vmem:[%s685_s5 + $0x38] sm:$0xff]  }
  0x3e   :  { %437 = vmatprep.mubr.msk.bf16.mxu0 %vm544_vm0, %v543_v0  ;;  %404 = vmatpush3.bf16.msra.mxu1 %v449_v6  ;;  %v357_v29 = vld [vmem:[#allocation6] ss:$0 sm:$0xff]  ;;  %v366_v37 = vld [vmem:[%s686_s6] ss:$0 sm:$0xff] }
  0x3f   :  { %405 = vmatprep.subr.bf16.mxu1 %v543_v0  ;;  %422 = vmatpush3.bf16.msra.mxu0 %v456_v13 }
  0x40   :  { %423 = vmatprep.subr.bf16.mxu0 %v543_v0 }
  0x42   :  { %406 = vmatpush3.bf16.msra.mxu1 %v450_v7 }
  0x43   :  { %407 = vmatprep.subr.bf16.mxu1 %v543_v0  ;;  %424 = vmatpush3.bf16.msra.mxu0 %v457_v14 }
  0x44   :  { %425 = vmatprep.subr.bf16.mxu0 %v543_v0 }
  0x46   :  { %408 = vmatpush3.bf16.msra.mxu1 %v451_v8 }
  0x47   :  { %409 = vmatprep.subr.bf16.mxu1 %v543_v0  ;;  %426 = vmatpush3.bf16.msra.mxu0 %v458_v15 }
  0x48   :  { %427 = vmatprep.subr.bf16.mxu0 %v543_v0 }
  0x4a   :  { %410 = vmatpush3.bf16.msra.mxu1 %v452_v9 }
  0x4b   :  { %411 = vmatprep.subr.bf16.mxu1 %v543_v0  ;;  %428 = vmatpush3.bf16.msra.mxu0 %v459_v16 }
  0x4c   :  { %429 = vmatprep.subr.bf16.mxu0 %v543_v0 }
  0x4e   :  { %412 = vmatpush3.bf16.msra.mxu1 %v453_v10 }
  0x4f   :  { %413 = vmatprep.subr.bf16.mxu1 %v543_v0  ;;  %430 = vmatpush3.bf16.msra.mxu0 %v460_v25 }
  0x50   :  { %431 = vmatprep.subr.bf16.mxu0 %v543_v0 }
  0x52   :  { %414 = vmatpush3.bf16.msra.mxu1 %v454_v11 }
  0x53   :  { %415 = vmatprep.subr.bf16.mxu1 %v543_v0  ;;  %432 = vmatpush3.bf16.msra.mxu0 %v461_v26 }
  0x54   :  { %433 = vmatprep.subr.bf16.mxu0 %v543_v0 }
  0x56   :  { %416 = vmatpush3.bf16.msra.mxu1 %v455_v12 }
  0x57   :  { %434 = vmatpush3.bf16.msra.mxu0 %v462_v27 }
  0x58   :  { %435 = vmatprep.subr.bf16.mxu0 %v543_v0 }
  0x5b   :  { %436 = vmatpush3.bf16.msra.mxu0 %v463_v28 }
 0x110   :  { %v116_v18 = vpop.f32.mrb[0].mxu0 }
 0x111   :  { %v117_v19 = vadd.f32 %v355_v17, %v116_v18  ;;  %v399_v20 = vpop.f32.mrb[1].mxu0 }
 0x112   :  { %v119_v21 = vpop.f32.mrb[2].mxu0 }
 0x113   :  { %464 = vtanh.f32 %v117_v19  ;;  %v400_v22 = vpop.f32.mrb[3].mxu0 }
 0x11d   :  { %v465_v23 = vpop.eup %464 }
 0x11e   :  { %v140_v24 = vpack.c.bf16 %v465_v23, %v465_v23 }
 0x120   :  { %418 = vmatmul.mubr.bf16.vlgmr.msra.gmra.mrb[0].mxu1 %v140_v24 }
 0x1f3   :  { %v229_v30 = vpop.f32.mrb[0].mxu1 }
 0x1f4   :  { %v230_v31 = vadd.f32 %v357_v29, %v229_v30  ;;  %v419_v32 = vpop.f32.mrb[1].mxu1 }
 0x1f5   :  { %v232_v33 = vpop.f32.mrb[2].mxu1 }
 0x1f6   :  { %466 = vtanh.f32 %v230_v31  ;;  %v420_v34 = vpop.f32.mrb[3].mxu1 }
 0x200   :  { %v467_v35 = vpop.eup %466 }
 0x201   :  { %v253_v36 = vpack.c.bf16 %v467_v35, %v467_v35 }
 0x203   :  { %438 = vmatmul.mubr.bf16.vlgmr.msra.gmra.mrb[4].mxu0 %v253_v36 }
 0x2d6   :  { %v342_v38 = vpop.f32.mrb[4].mxu0 }
 0x2d7   :  { %v343_v39 = vadd.f32 %v366_v37, %v342_v38  ;;  %v439_v40 = vpop.f32.mrb[5].mxu0 }
 0x2d8   :  { %v345_v41 = vpop.f32.mrb[6].mxu0 }
 0x2d9   :  { %348 = vst [vmem:[%s687_s7] sm:$0xff] %v343_v39  ;;  %v440_v42 = vpop.f32.mrb[7].mxu0 }
 0x2da   :  { %353 = vsyncpa [#allocation3], 1 }
 0x2db   :  { %354 = vsyncpa [#allocation5], 1 }

</bundles_post_ra>
